<compile_context>
chip_gen: v6e
topology: v6e:2x2x1
jax: 0.10.0
libtpu: 0.0.40
codegen_flags: <defaults>
</compile_context>

<pallas_src>
import functools

import jax
import jax.numpy as jnp
from jax.experimental import pallas as pl
from jax.experimental.pallas import tpu as pltpu


def _round_up(x: int, m: int) -> int:
    return ((x + m - 1) // m) * m


def _wide_kernel(x_ref, w_ref, b_ref, o_ref, *, tk, d_valid):
    """One (batch-tile, k-tile) step of out = X @ W^T + b.

    x_ref: (tm, tk)  X tile (bf16 or f32)
    w_ref: (tk, OP)  pre-transposed weight tile (bf16 or f32), K zero-padded
    b_ref: (1,  OP)  bias (f32), O zero-padded
    o_ref: (tm, OP)  f32 output block, resident across the k axis
    """
    k = pl.program_id(1)

    @pl.when(k == 0)
    def _init():
        # Bias added exactly once, by initialising the resident output block.
        o_ref[...] = jnp.broadcast_to(b_ref[...], o_ref.shape)

    x = x_ref[...]
    if d_valid is not None:
        # Static flag: tk does not divide D, so the last k tile reads past the
        # end of X (unspecified values).  Mask those columns to zero; the
        # matching W rows are zero-padded in the wrapper, so 0 * 0 = 0.
        col = jax.lax.broadcasted_iota(jnp.int32, x.shape, 1) + k * tk
        x = jnp.where(col < d_valid, x, jnp.zeros_like(x))

    # No explicit upcast of X: bf16 x bf16 -> f32 accumulate on the MXU.
    o_ref[...] += jnp.dot(x, w_ref[...], preferred_element_type=jnp.float32)


def _xla_forward(x, weight, bias):
    return x.astype(jnp.float32) @ weight.astype(jnp.float32).T + bias.astype(
        jnp.float32
    )


def wide_forward(
    x,
    weight,
    bias,
    *,
    tm=1024,
    tk=None,
    cast_w_to_bf16=True,
    vmem_limit_bytes=48 * 1024 * 1024,
    xla_fallback_elems=1 << 18,
):
    """Pallas equivalent of nn.Linear(wide_dim, output_dim)(X.float()).

    x: (B, D); weight: (O, D); bias: (O,)  ->  (B, O) float32.

    Notes:
      * X is streamed in its incoming float dtype (bf16 exact for 0/1 one-hot
        wide inputs); non-float X is cast to f32 (== X.float()).
      * cast_w_to_bf16=True keeps f32 accumulation but rounds W to bf16
        (~2^-9 relative) -- fine for a wide scoring head; set False for exact.
      * v5e / v6e (128 MiB VMEM): consider tm=2048, vmem_limit_bytes≈100 MiB.
        Defaults are sized for the tightest generation (v7x, 64 MiB).
    """
    B, D = x.shape
    O, D_w = weight.shape
    assert D_w == D, "weight shape must be (output_dim, wide_dim)"

    # Tiny problems: XLA's fused dot beats pallas_call fixed overhead.
    if B * D <= xla_fallback_elems:
        return _xla_forward(x, weight, bias)

    # Match X.float() semantics without adding an HBM copy for float inputs.
    if x.dtype not in (jnp.bfloat16, jnp.float32):
        x = x.astype(jnp.float32)

    # ---- wrapper-side layout plumbing (W / bias only: tiny vs the X stream) --
    OP = _round_up(max(O, 1), 128)                       # lane-dense output width
    w_dtype = jnp.bfloat16 if cast_w_to_bf16 else jnp.float32

    # ---- tile sizes: (8, 128)-aligned, budgeted for the 64 MiB (v7x) VMEM ----
    tm = int(tm)
    tm = B if tm >= B else max(8, (tm // 8) * 8)

    x_bytes = x.dtype.itemsize
    w_bytes = jnp.dtype(w_dtype).itemsize
    if tk is None:
        # One X tile + one W tile <= ~18 MiB -> ~36-40 MiB with double-buffering.
        budget = 18 * 1024 * 1024
        per_col = tm * x_bytes + OP * w_bytes
        tk = max(128, ((budget // per_col) // 128) * 128)
    tk = int(tk)
    tk = D if tk >= D else max(128, (tk // 128) * 128)

    Dp = _round_up(D, tk)                                # K extent of padded W

    # W: transpose once to MXU-native (K, N), zero-pad O->OP and D->Dp.
    wt = weight.astype(w_dtype).T                        # (D, O)
    wp = jnp.pad(wt, ((0, Dp - D), (0, OP - O)))         # (Dp, OP)
    bp = jnp.pad(bias.astype(jnp.float32).reshape(1, O), ((0, 0), (0, OP - O)))

    kernel = functools.partial(
        _wide_kernel, tk=tk, d_valid=(D if D % tk else None)
    )

    grid = (pl.cdiv(B, tm), pl.cdiv(D, tk))              # reduction axis LAST

    out = pl.pallas_call(
        kernel,
        out_shape=jax.ShapeDtypeStruct((B, OP), jnp.float32),
        grid_spec=pltpu.PrefetchScalarGridSpec(
            num_scalar_prefetch=0,
            grid=grid,
            in_specs=[
                pl.BlockSpec((tm, tk), lambda i, k: (i, k)),   # X: stream over D
                pl.BlockSpec((tk, OP), lambda i, k: (k, 0)),   # W^T: (K, N) tiles
                pl.BlockSpec((1, OP), lambda i, k: (0, 0)),    # bias: resident
            ],
            # Output resident across k -> accumulate directly into it.
            out_specs=pl.BlockSpec((tm, OP), lambda i, k: (i, 0)),
        ),
        compiler_params=pltpu.CompilerParams(
            dimension_semantics=("parallel", "arbitrary"),
            vmem_limit_bytes=vmem_limit_bytes,
        ),
    )(x, wp, bp)

    return out[:, :O]


if __name__ == "__main__":
    key = jax.random.PRNGKey(0)
    k1, k2, k3, k4, k5, k6 = jax.random.split(key, 6)

    # ---- test 1: canonical Wide use case (binary one-hot input, output_dim=1)
    #      bf16 X stream (exact for 0/1), f32 W -> exact vs reference. --------
    B, D, O = 8, 32, 1
    X = jax.random.bernoulli(k1, 0.5, (B, D)).astype(jnp.bfloat16)
    bound = 1.0 / (D ** 0.5)
    W = jax.random.uniform(k2, (O, D), jnp.float32, -bound, bound)
    b = jax.random.uniform(k3, (O,), jnp.float32, -bound, bound)

    out1 = jax.block_until_ready(
        wide_forward(X, W, b, cast_w_to_bf16=False, xla_fallback_elems=0)
    )
    ref1 = X.astype(jnp.float32) @ W.T + b
    assert out1.shape == (B, O)
    assert jnp.allclose(out1, ref1, atol=1e-5, rtol=1e-5), "test1 mismatch"

    # ---- test 1b: same data on the default fast path (bf16 X x bf16 W). -----
    out1b = jax.block_until_ready(wide_forward(X, W, b, xla_fallback_elems=0))
    assert jnp.allclose(out1b, ref1, atol=1e-2, rtol=1e-2), "test1b mismatch"

    # ---- test 2: tiled + masked path (multi-block batch + reduction, D not a
    #      multiple of tk, padded O, f32 X, default bf16 W). ------------------
    B2, D2, O2 = 24, 400, 3
    X2 = jax.random.normal(k4, (B2, D2), jnp.float32)
    bound2 = 1.0 / (D2 ** 0.5)
    W2 = jax.random.uniform(k5, (O2, D2), jnp.float32, -bound2, bound2)
    b2 = jax.random.uniform(k6, (O2,), jnp.float32, -bound2, bound2)

    out2 = jax.block_until_ready(
        wide_forward(X2, W2, b2, tm=8, tk=128, xla_fallback_elems=0)
    )
    ref2 = X2 @ W2.T + b2
    assert out2.shape == (B2, O2)
    assert jnp.allclose(out2, ref2, atol=2e-2, rtol=2e-2), "test2 mismatch"

    # ---- test 3: tiny-problem XLA fallback path (default threshold). --------
    out3 = jax.block_until_ready(wide_forward(X2, W2, b2))
    assert jnp.allclose(out3, ref2, atol=1e-4, rtol=1e-4), "test3 mismatch"

    print("KERNEL_OK")
</pallas_src>

<mosaic_0001>
module attributes {stable_mosaic.version = 11 : i64} {
  func.func @_wide_kernel(%arg0: i32, %arg1: i32, %arg2: memref<8x32xbf16, #tpu.memory_space<vmem>>, %arg3: memref<32x128xf32, #tpu.memory_space<vmem>>, %arg4: memref<1x128xf32, #tpu.memory_space<vmem>>, %arg5: memref<8x128xf32, #tpu.memory_space<vmem>>) attributes {dimension_semantics = [#tpu.dimension_semantics<parallel>, #tpu.dimension_semantics<arbitrary>], iteration_bounds = array<i64: 1, 1>, scalar_prefetch = 0 : i64, scratch_operands = 0 : i64, tpu.core_type = #tpu.core_type<tc>, window_params = [{transform_indices = @transform_0, window_bounds = array<i64: 8, 32>}, {transform_indices = @transform_1, window_bounds = array<i64: 32, 128>}, {pipeline_mode = #tpu.pipeline_mode<synchronous>, transform_indices = @transform_2, window_bounds = array<i64: 1, 128>}, {transform_indices = @transform_3, window_bounds = array<i64: 8, 128>}]} {
    %c0_i32 = arith.constant 0 : i32
    %0 = arith.cmpi eq, %arg1, %c0_i32 : i32
    %1 = arith.extui %0 : i1 to i32
    %c0_i32_0 = arith.constant 0 : i32
    %2 = arith.cmpi ne, %1, %c0_i32_0 : i32
    scf.if %2 {
      %c0_8 = arith.constant 0 : index
      %c0_9 = arith.constant 0 : index
      %9 = vector.load %arg4[%c0_8, %c0_9] : memref<1x128xf32, #tpu.memory_space<vmem>>, vector<1x128xf32>
      %10 = vector.shape_cast %9 : vector<1x128xf32> to vector<1x128xf32>
      %11 = vector.broadcast %10 : vector<1x128xf32> to vector<8x128xf32>
      %c0_10 = arith.constant 0 : index
      %c0_11 = arith.constant 0 : index
      %12 = vector.load %arg5[%c0_10, %c0_11] : memref<8x128xf32, #tpu.memory_space<vmem>>, vector<8x128xf32>
      tpu.vector_store %arg5[%c0_10, %c0_11], %11 {strides = array<i32>} : memref<8x128xf32, #tpu.memory_space<vmem>>, vector<8x128xf32>,
    } else {
    }
    %c0 = arith.constant 0 : index
    %c0_1 = arith.constant 0 : index
    %3 = vector.load %arg2[%c0, %c0_1] : memref<8x32xbf16, #tpu.memory_space<vmem>>, vector<8x32xbf16>
    %c0_2 = arith.constant 0 : index
    %c0_3 = arith.constant 0 : index
    %4 = vector.load %arg5[%c0_2, %c0_3] : memref<8x128xf32, #tpu.memory_space<vmem>>, vector<8x128xf32>
    %c0_4 = arith.constant 0 : index
    %c0_5 = arith.constant 0 : index
    %5 = vector.load %arg3[%c0_4, %c0_5] : memref<32x128xf32, #tpu.memory_space<vmem>>, vector<32x128xf32>
    %cst = arith.constant dense<0.000000e+00> : vector<8x128xf32>
    %6 = tpu.matmul %3, %5, %cst {dimension_numbers = #tpu.dot_dimension_numbers<[1], [0], [0], [1], [0, 0, 1, 1], [], []>} : vector<8x32xbf16>, vector<32x128xf32>, vector<8x128xf32> -> vector<8x128xf32>
    %7 = arith.addf %4, %6 : vector<8x128xf32>
    %c0_6 = arith.constant 0 : index
    %c0_7 = arith.constant 0 : index
    %8 = vector.load %arg5[%c0_6, %c0_7] : memref<8x128xf32, #tpu.memory_space<vmem>>, vector<8x128xf32>
    tpu.vector_store %arg5[%c0_6, %c0_7], %7 {strides = array<i32>} : memref<8x128xf32, #tpu.memory_space<vmem>>, vector<8x128xf32>,
    return
  }
  func.func @transform_0(%arg0: i32, %arg1: i32) -> (i32, i32) {
    %c0_i32 = arith.constant 0 : i32
    return %arg0, %arg1 : i32, i32
  }
  func.func @transform_1(%arg0: i32, %arg1: i32) -> (i32, i32) {
    %c0_i32 = arith.constant 0 : i32
    %c0_i32_0 = arith.constant 0 : i32
    return %arg1, %c0_i32 : i32, i32
  }
  func.func @transform_2(%arg0: i32, %arg1: i32) -> (i32, i32) {
    %c0_i32 = arith.constant 0 : i32
    %c0_i32_0 = arith.constant 0 : i32
    %c0_i32_1 = arith.constant 0 : i32
    return %c0_i32, %c0_i32_0 : i32, i32
  }
  func.func @transform_3(%arg0: i32, %arg1: i32) -> (i32, i32) {
    %c0_i32 = arith.constant 0 : i32
    %c0_i32_0 = arith.constant 0 : i32
    return %arg0, %c0_i32 : i32, i32
  }
}

</mosaic_0001>

<bundles_post_ra>
// kernel: tpu_custom_call.1
= control target key start
LH: loop header
LB: loop body
LE: loop exit
PB: predicated region body
PF: predicated region fallthrough
CT: control target
= control target key end

     0   :  { %8 = vsyncpa [#allocation3], 0  ;;  %s285_s0 = inlined_call_operand.hbm [shape: bf16[8,32], index: 0, kind: input, shape index: {}]   ;;  %s286_s1 = inlined_call_operand.hbm [shape: f32[32,128], index: 1, kind: input, shape index: {}]   ;;  %s287_s2 = inlined_call_operand.vmem [shape: f32[1,128], index: 2, kind: input, shape index: {}]   ;;  %s288_s3 = inlined_call_operand.hbm [shape: f32[8,128], index: 3, kind: output, shape index: {}]  }
   0x1   :  { %9 = vsyncpa [#allocation6], 0 }
   0x2   :  { %10 = vsyncpa [#allocation4], 0  ;;  %s246_s12 = smov [#allocation2]   ;;  %s247_s14 = smov [#allocation5]  }
   0x3   :  { %s17_s13 = sshll.u32 %s246_s12, 4  ;;  %s26_s15 = sshll.u32 %s247_s14, 4  ;;  %s18_s13 = int_to_ptr.vmem [resolvable:$true] %s17_s13  ;;  %s27_s15 = int_to_ptr.vmem [resolvable:$true] %s26_s15 }
   0x4   :  { %s188_s16 = scalar_lea.vmem %s18_s13, 64  ;;  %p193_p1 = scmp.lt.s32.totalorder %s18_s13, %s18_s13 }
   0x5   :  { %p189_p0 = scmp.ne.s32.totalorder %s18_s13, %s188_s16  ;;  %p194_p2 = scmp.lt.s32.totalorder %s188_s16, %s188_s16 }
   0x7   :  { %p195_p3 = por %p194_p2, %p193_p1 }
   0x9   :  { %p196_p4 = pnand %p195_p3, %p189_p0 }
   0xb   :  { %199 = shalt.err (!%p196_p4)
}
   0xc   :  { %20 = dma.hbm_to_vmem [thread:$0]  %s285_s0, 64, %s18_s13, [#allocation3]  }
   0xd   :  { %s208_s19 = scalar_lea.vmem %s27_s15, 512  ;;  %p213_p6 = scmp.lt.s32.totalorder %s27_s15, %s27_s15 }
   0xe   :  { %p209_p5 = scmp.ne.s32.totalorder %s27_s15, %s208_s19  ;;  %p214_p7 = scmp.lt.s32.totalorder %s208_s19, %s208_s19 }
  0x10   :  { %p215_p8 = por %p214_p7, %p213_p6 }
  0x12   :  { %p216_p9 = pnand %p215_p8, %p209_p5 }
  0x14   :  { %219 = shalt.err (!%p216_p9)
}
  0x15   :  { %s248_s20 = smov 128   ;;  %s249_s21 = smov 8  }
  0x16   :  { %32 = dma.hbm_to_vmem [thread:$0]  %s286_s1, 512, %s27_s15, [#allocation6], %s248_s20, %s248_s20, %s249_s21  }
  0x17   :  { %240 = dma.done.wait [#allocation3], 64  }
  0x18   :  { %241 = vsyncadd [#allocation3], 4294967232 }
  0x19   :  { %242 = dma.done.wait [#allocation6], 512  }
  0x1a   :  { %243 = vsyncadd [#allocation6], 4294966784  ;;  %v250_v0 = vmov 0.0   ;;  %vm251_vm0 = vmmov 0   ;;  %v59_v1 = vld [vmem:[#allocation5 + $0x18] sm:$0xff]  ;;  %v58_v2 = vld [vmem:[#allocation5 + $0x10] sm:$0xff] }
  0x1b   :  { %161 = vmatprep.subr.mxu0 %v250_v0  ;;  %169 = vmatprep.mubr.msk.bf16.mxu0 %vm251_vm0, %v250_v0  ;;  %v57_v3 = vld [vmem:[#allocation5 + $0x8] sm:$0xff]  ;;  %v56_v4 = vld [vmem:[#allocation5] sm:$0xff]  ;;  %v54_v5 = vld [vmem:[#allocation2] sm:$0xf]  ;;  %vm60_vm1 = vcmask 261120   ;;  %s252_s24 = smov [#allocation7]  }
  0x1c   :  { %162 = vmatpush3.msra.mxu0 %v59_v1  ;;  %v154_v6 = vld [vmem:[%s287_s2] ss:$0 sm:$0xff]  ;;  %s144_s25 = sshll.u32 %s252_s24, 4  ;;  %s145_s25 = int_to_ptr.vmem [resolvable:$true] %s144_s25 }
  0x1d   :  { %163 = vmatprep.subr.mxu0 %v250_v0  ;;  %s220_s26 = scalar_lea.vmem %s145_s25, 128  ;;  %p225_p11 = scmp.lt.s32.totalorder %s145_s25, %s145_s25 }
  0x1e   :  { %164 = vmatpush3.msra.mxu0 %v58_v2  ;;  %p221_p10 = scmp.ne.s32.totalorder %s145_s25, %s220_s26  ;;  %p226_p12 = scmp.lt.s32.totalorder %s220_s26, %s220_s26 }
  0x1f   :  { %165 = vmatprep.subr.mxu0 %v250_v0 }
  0x20   :  { %166 = vmatpush3.msra.mxu0 %v57_v3  ;;  %p227_p13 = por %p226_p12, %p225_p11 }
  0x21   :  { %167 = vmatprep.subr.mxu0 %v250_v0 }
  0x22   :  { %168 = vmatpush3.msra.mxu0 %v56_v4  ;;  %p228_p0 = pnand %p227_p13, %p221_p10 }
  0x23   :  { %170 = vmatmul.mubr.msk.bf16.vlgmr.msra.gmra.mxu0 %vm60_vm1, %v54_v5 }
  0xe3   :  { %v130_v7 = vpop.f32.mrf.mxu0 }
  0xe4   :  { %v136_v8 = vadd.f32 %v154_v6, %v130_v7 }
  0xe5   :  { %v171_v9 = vpop.f32.mrf.mxu0 }
  0xe6   :  { %137 = vst [vmem:[#allocation7] sm:$0xff] %v136_v8 }
  0xe7   :  { %v133_v10 = vpop.f32.mrf.mxu0 }
  0xe8   :  { %231 = shalt.err (!%p228_p0)
}
  0xe9   :  { %147 = dma.vmem_to_hbm [thread:$0]  %s145_s25, 128, %s288_s3, [#allocation4]   ;;  %v172_v11 = vpop.f32.mrf.mxu0 }
  0xea   :  { %244 = dma.done.wait [#allocation4], 128  }
  0xeb   :  { %245 = vsyncadd [#allocation4], 4294967168 }
  0xec   :  { %151 = vsyncpa [#allocation3], 1 }
  0xed   :  { %152 = vsyncpa [#allocation6], 1 }
  0xee   :  { %153 = vsyncpa [#allocation4], 1 }

</bundles_post_ra>
